<compile_context>
chip_gen: v6e
topology: v6e:2x2x1
jax: 0.10.0
libtpu: 0.0.40
codegen_flags: <defaults>
</compile_context>

<pallas_src>
import jax
import jax.numpy as jnp
from jax import lax
from jax.experimental import pallas as pl
from jax.experimental.pallas import tpu as pltpu

# ---------------------------------------------------------------------------
# Configuration (mirrors STMH_GCNN_layer(in_channels=4, out_channels=4,
# emb_size=16, dropout=0.3, time_d=16, heads=4, support_len=3, order=2,
# final_layer=False, dynamic_dim=16, node_num=8))
# ---------------------------------------------------------------------------
N = 2            # batch
C_IN = 4         # in_channels
C_OUT = 4        # out_channels (== in_channels -> Identity residual)
V = 8            # graph nodes (node_num)
T = 8            # time steps
EMB = 16         # emb_size (time embedding dim, even)
TIME_D = 16      # attention projection dim d
HEADS = 4
SUPPORT_LEN = 3
ORDER = 2
DYN_DIM = 16
TOTAL_SUPPORTS = SUPPORT_LEN + 1
GC_IN = (ORDER * TOTAL_SUPPORTS + 1) * C_IN      # 36
DROPOUT_P = 0.3  # eval-mode -> identity

CV = C_IN * V        # 32   rows of the activation slab (c, v)
OV = C_OUT * V       # 32   rows of the output slab (o, w)
NT = N * T           # 16   lanes (n, t)
GOP_COLS = CV + 2    # folded operator + bias column + alpha column


# ---------------------------------------------------------------------------
# Pallas kernel: batch-fused (temporal mixing -> folded diffusion+conv ->
# bias -> residual -> PReLU).  Two matmuls, no scratch, no regroup loops.
# ---------------------------------------------------------------------------
def _stmh_kernel(xop_ref, gop_ref, o_ref):
    f32 = jnp.float32
    hi = lax.Precision.HIGHEST

    # Packed activation buffer: rows 0:CV = x laid out as (c*V+v, n*T+t);
    # rows CV:CV+NT = block-diagonal temporal mixing matrix (att weights
    # precomputed in the wrapper).  Sublane-aligned static slices only.
    x2 = xop_ref[pl.ds(0, CV), :]                  # (C*V, N*T)
    matt = xop_ref[pl.ds(CV, NT), :]               # (N*T, N*T)

    # ---- temporal multi-head attention mixing (one matmul) ------------------
    xt = jnp.dot(x2, matt, precision=hi, preferred_element_type=f32)

    # ---- GCN diffusion (order-2, 4 fused supports) + 1x1 conv ---------------
    # Folded in the wrapper into a single (C_OUT*V, C_IN*V) operator G, so the
    # whole graph-conv stage is one matmul (no per-support hops, no regroup).
    g = gop_ref[:, pl.ds(0, CV)]                   # (C_OUT*V, C*V)
    y = jnp.dot(g, xt, precision=hi, preferred_element_type=f32)

    # ---- bias + identity residual + PReLU -----------------------------------
    y = y + gop_ref[:, pl.ds(CV, 1)]               # conv bias per (o, w) row
    y = y + x2                                     # identity residual (C_OUT == C_IN)
    alpha = gop_ref[:, pl.ds(CV + 1, 1)]           # PReLU alpha (replicated column)
    y = jnp.where(y >= 0.0, y, alpha * y)
    # TODO(synk): F.dropout reproduced in eval mode only (identity); training-mode RNG not replicated.
    o_ref[...] = y.astype(o_ref.dtype)             # (C_OUT*V, N*T)


# ---------------------------------------------------------------------------
# Plain-JAX glue (parameter / attention preprocessing — batch-small, hoisted)
# ---------------------------------------------------------------------------
def _dynamic_adjacency(params):
    ne = params["node_emb"]
    ne = ne / jnp.maximum(jnp.linalg.norm(ne, axis=-1, keepdims=True), 1e-12)
    nv, hd = ne.shape
    pairs = jnp.concatenate(
        [jnp.broadcast_to(ne[:, None, :], (nv, nv, hd)),
         jnp.broadcast_to(ne[None, :, :], (nv, nv, hd))], axis=-1)   # (V, V, 2*hd)
    hmid = jax.nn.relu(pairs @ params["mlp_w1"].T + params["mlp_b1"])
    adj = (hmid @ params["mlp_w2"].T + params["mlp_b2"])[..., 0]
    return jax.nn.softmax(adj, axis=-1)


def _fused_supports(supports, params):
    dyn = _dynamic_adjacency(params)
    all_adj = list(supports) + [dyn]
    w = jax.nn.softmax(params["fusion_weights"])
    return [w[i] * a for i, a in enumerate(all_adj)]


def _time_embeddings(t_in, params):
    div = jnp.arange(0, EMB, 2, dtype=jnp.float32)          # (EMB/2,)
    embs = []
    for h in range(HEADS):
        div_term = jnp.exp(div * params["factor"][h])
        phase = jnp.einsum("bt,f->btf", t_in, div_term)     # (N, T, EMB/2)
        embs.append(jnp.concatenate([jnp.sin(phase), jnp.cos(phase)], axis=-1))
    return jnp.stack(embs, axis=0)                          # (H, N, T, EMB)


def _attention_sum(t_in, params):
    """Head-summed temporal attention, hoisted out of the kernel. (N, T, T)."""
    emb = _time_embeddings(t_in, params)                    # (H, N, T, EMB)
    inv = 1.0 / (TIME_D ** 0.5)
    att = jnp.zeros((t_in.shape[0], t_in.shape[1], t_in.shape[1]), jnp.float32)
    for h in range(HEADS):
        q = jnp.einsum("btf,df->btd", emb[h], params["wq"][h])
        k = jnp.einsum("btf,df->btd", emb[h], params["wk"][h])
        s = jnp.einsum("btd,bpd->btp", q, k) * inv
        att = att + jax.nn.softmax(s, axis=-1)
    return att                                              # att[n, query_p, key_t]


def stmh_gcnn_layer_pallas(x, t_in, supports, params):
    n, c, v, t = x.shape
    assert (n, c, v, t) == (N, C_IN, V, T)
    # Identity residual path only; projection+BN residual / final_layer=True not implemented.
    assert C_OUT == C_IN, "identity residual requires out_channels == in_channels"
    hi = lax.Precision.HIGHEST
    x = x.astype(jnp.float32)

    # ---- parameter-only folding: diffusion (I, A_s, A_s^2) (x) 1x1 conv -> G
    fused = _fused_supports(supports, params)                         # 4 x (V, V)
    a = jnp.stack(fused, axis=0).astype(jnp.float32)                  # (S, V, V)
    a2 = jnp.einsum("suv,svw->suw", a, a, precision=hi)               # A_s @ A_s
    nodeops = [jnp.eye(V, dtype=jnp.float32)]
    for s in range(TOTAL_SUPPORTS):
        nodeops.append(a[s])
        nodeops.append(a2[s])
    nops = jnp.stack(nodeops, axis=0)                                 # (9, V, V) [v, w]
    wg = params["conv_w"].astype(jnp.float32).reshape(
        C_OUT, ORDER * TOTAL_SUPPORTS + 1, C_IN)                      # (O, 9, C)
    gmat = jnp.einsum("ogc,gvw->owcv", wg, nops, precision=hi).reshape(OV, CV)

    bias_col = jnp.broadcast_to(params["conv_b"].astype(jnp.float32)[:, None],
                                (C_OUT, V)).reshape(OV, 1)
    alpha_col = jnp.full((OV, 1), params["prelu"], dtype=jnp.float32)
    gop = jnp.concatenate([gmat, bias_col, alpha_col], axis=1)        # (32, 34)

    # ---- data-dependent temporal mixing matrix (block-diagonal over batch) --
    att = _attention_sum(t_in, params)                                # (N, T, T) [n, p, t]
    att_t = jnp.transpose(att, (0, 2, 1))                             # [n, t, p]
    eye_n = jnp.eye(N, dtype=jnp.float32)
    matt = (eye_n[:, None, :, None] * att_t[:, :, None, :]).reshape(NT, NT)

    # ---- activations: rows=(c,v), lanes=(n,t); packed with matt (one DMA) ---
    x2 = jnp.transpose(x, (1, 2, 0, 3)).reshape(CV, NT)               # (32, 16)
    xop = jnp.concatenate([x2, matt], axis=0)                         # (48, 16)

    flops = 2 * CV * NT * NT + 2 * OV * CV * NT
    bytes_accessed = 4 * (xop.size + gop.size + OV * NT)

    out2 = pl.pallas_call(
        _stmh_kernel,
        out_shape=jax.ShapeDtypeStruct((OV, NT), jnp.float32),
        grid=(1,),
        in_specs=[
            pl.BlockSpec((CV + NT, NT), lambda i: (0, 0)),            # x2 + matt
            pl.BlockSpec((OV, GOP_COLS), lambda i: (0, 0)),           # G | bias | alpha
        ],
        out_specs=pl.BlockSpec((OV, NT), lambda i: (0, 0)),
        compiler_params=pltpu.CompilerParams(dimension_semantics=("arbitrary",)),
        cost_estimate=pl.CostEstimate(flops=flops, transcendentals=0,
                                      bytes_accessed=bytes_accessed),
    )(xop, gop)

    # rows=(c_out, w), lanes=(n, t)  ->  (N, C_OUT, V, T)   (2 KiB layout plumbing)
    return out2.reshape(C_OUT, V, N, T).transpose(2, 0, 1, 3)


# ---------------------------------------------------------------------------
# Pure-JAX reference (mirrors the PyTorch einsum formulation) for validation
# ---------------------------------------------------------------------------
def stmh_gcnn_layer_reference(x, t_in, supports, params):
    fused = _fused_supports(supports, params)
    emb = _time_embeddings(t_in, params)                    # (H, N, T, EMB)
    att = []
    for h in range(HEADS):
        q = jnp.einsum("btf,df->btd", emb[h], params["wq"][h])
        k = jnp.einsum("btf,df->btd", emb[h], params["wk"][h])
        a = jnp.einsum("btf,bpf->btp", q, k) / (TIME_D ** 0.5)
        att.append(jax.nn.softmax(a, axis=-1))
    res = x
    xt = sum(jnp.einsum("ncvt,npt->ncvp", x, a) for a in att)
    out = [xt]
    for a in fused:
        x1 = jnp.einsum("ncvl,vw->ncwl", xt, a)
        out.append(x1)
        for _ in range(2, ORDER + 1):
            x2_ = jnp.einsum("ncvl,vw->ncwl", x1, a)
            out.append(x2_)
            x1 = x2_
    hcat = jnp.concatenate(out, axis=1)                     # (N, GC_IN, V, T)
    y = jnp.einsum("og,ngvt->novt", params["conv_w"], hcat) \
        + params["conv_b"][None, :, None, None]
    y = y + res
    y = jnp.where(y >= 0.0, y, params["prelu"] * y)
    return y


if __name__ == "__main__":
    # High-precision f32 matmuls everywhere (reference + wrapper) so validation
    # tolerance stays tight; the kernel uses explicit Precision.HIGHEST.
    jax.config.update("jax_default_matmul_precision", "highest")

    key = jax.random.PRNGKey(0)
    ks = jax.random.split(key, 16)
    params = {
        "node_emb": jax.random.normal(ks[0], (V, DYN_DIM), jnp.float32),
        "mlp_w1": 0.3 * jax.random.normal(ks[1], (DYN_DIM, 2 * DYN_DIM), jnp.float32),
        "mlp_b1": 0.1 * jax.random.normal(ks[2], (DYN_DIM,), jnp.float32),
        "mlp_w2": 0.3 * jax.random.normal(ks[3], (1, DYN_DIM), jnp.float32),
        "mlp_b2": 0.1 * jax.random.normal(ks[4], (1,), jnp.float32),
        "fusion_weights": jnp.concatenate(
            [0.1 * jnp.ones((SUPPORT_LEN,), jnp.float32),
             0.9 * jnp.ones((1,), jnp.float32)]),
        "factor": 0.1 * jax.random.normal(ks[5], (HEADS,), jnp.float32),
        "wq": 0.3 * jax.random.normal(ks[6], (HEADS, TIME_D, EMB), jnp.float32),
        "wk": 0.3 * jax.random.normal(ks[7], (HEADS, TIME_D, EMB), jnp.float32),
        "conv_w": 0.2 * jax.random.normal(ks[8], (C_OUT, GC_IN), jnp.float32),
        "conv_b": 0.1 * jax.random.normal(ks[9], (C_OUT,), jnp.float32),
        "prelu": jnp.float32(0.25),
    }
    x = jax.random.normal(ks[10], (N, C_IN, V, T), jnp.float32)
    t_in = jax.random.uniform(ks[11], (N, T), dtype=jnp.float32)
    supports = [
        jax.nn.softmax(jax.random.normal(ks[12 + i], (V, V), jnp.float32), axis=-1)
        for i in range(SUPPORT_LEN)
    ]

    out = jax.block_until_ready(stmh_gcnn_layer_pallas(x, t_in, supports, params))
    ref = stmh_gcnn_layer_reference(x, t_in, supports, params)

    assert out.shape == (N, C_OUT, V, T), out.shape
    err = float(jnp.max(jnp.abs(out - ref)))
    # Slightly looser than 1e-5 because the wrapper folds the (parameter-only)
    # diffusion/conv algebra, which reassociates the f32 sums vs the reference.
    tol = 3e-5 * (1.0 + float(jnp.max(jnp.abs(ref))))
    assert err < tol, f"max abs err {err} exceeds tol {tol}"
    print("KERNEL_OK")
</pallas_src>

<mosaic_0001>
module attributes {stable_mosaic.version = 11 : i64} {
  func.func @_stmh_kernel(%arg0: i32, %arg1: memref<48x16xf32, #tpu.memory_space<vmem>>, %arg2: memref<32x34xf32, #tpu.memory_space<vmem>>, %arg3: memref<32x16xf32, #tpu.memory_space<vmem>>) attributes {dimension_semantics = [#tpu.dimension_semantics<arbitrary>], iteration_bounds = array<i64: 1>, scalar_prefetch = 0 : i64, scratch_operands = 0 : i64, tpu.core_type = #tpu.core_type<tc>, window_params = [{pipeline_mode = #tpu.pipeline_mode<synchronous>, transform_indices = @transform_0, window_bounds = array<i64: 48, 16>}, {pipeline_mode = #tpu.pipeline_mode<synchronous>, transform_indices = @transform_1, window_bounds = array<i64: 32, 34>}, {pipeline_mode = #tpu.pipeline_mode<synchronous>, transform_indices = @transform_2, window_bounds = array<i64: 32, 16>}]} {
    %c0 = arith.constant 0 : index
    %c0_0 = arith.constant 0 : index
    %0 = vector.load %arg1[%c0, %c0_0] : memref<48x16xf32, #tpu.memory_space<vmem>>, vector<32x16xf32>
    %c32 = arith.constant 32 : index
    %c0_1 = arith.constant 0 : index
    %1 = vector.load %arg1[%c32, %c0_1] : memref<48x16xf32, #tpu.memory_space<vmem>>, vector<16x16xf32>
    %cst = arith.constant dense<0.000000e+00> : vector<32x16xf32>
    %2 = tpu.matmul %0, %1, %cst {dimension_numbers = #tpu.dot_dimension_numbers<[1], [0], [0], [1], [0, 0, 1, 1], [], []>, precision = #tpu.contract_precision<fp32>} : vector<32x16xf32>, vector<16x16xf32>, vector<32x16xf32> -> vector<32x16xf32>
    %c0_2 = arith.constant 0 : index
    %c0_3 = arith.constant 0 : index
    %3 = vector.load %arg2[%c0_2, %c0_3] : memref<32x34xf32, #tpu.memory_space<vmem>>, vector<32x32xf32>
    %cst_4 = arith.constant dense<0.000000e+00> : vector<32x16xf32>
    %4 = tpu.matmul %3, %2, %cst_4 {dimension_numbers = #tpu.dot_dimension_numbers<[1], [0], [0], [1], [0, 0, 1, 1], [], []>, precision = #tpu.contract_precision<fp32>} : vector<32x32xf32>, vector<32x16xf32>, vector<32x16xf32> -> vector<32x16xf32>
    %c0_5 = arith.constant 0 : index
    %c32_6 = arith.constant 32 : index
    %5 = vector.load %arg2[%c0_5, %c32_6] : memref<32x34xf32, #tpu.memory_space<vmem>>, vector<32x1xf32>
    %6 = vector.broadcast %5 : vector<32x1xf32> to vector<32x16xf32>
    %7 = arith.addf %4, %6 : vector<32x16xf32>
    %8 = arith.addf %7, %0 : vector<32x16xf32>
    %c0_7 = arith.constant 0 : index
    %c33 = arith.constant 33 : index
    %9 = vector.load %arg2[%c0_7, %c33] : memref<32x34xf32, #tpu.memory_space<vmem>>, vector<32x1xf32>
    %cst_8 = arith.constant 0.000000e+00 : f32
    %10 = vector.broadcast %cst_8 : f32 to vector<32x16xf32>
    %11 = arith.cmpf oge, %8, %10 : vector<32x16xf32>
    %12 = vector.broadcast %9 : vector<32x1xf32> to vector<32x16xf32>
    %13 = arith.mulf %12, %8 : vector<32x16xf32>
    %14 = arith.select %11, %8, %13 : vector<32x16xi1>, vector<32x16xf32>
    %c0_9 = arith.constant 0 : index
    %c0_10 = arith.constant 0 : index
    %15 = vector.load %arg3[%c0_9, %c0_10] : memref<32x16xf32, #tpu.memory_space<vmem>>, vector<32x16xf32>
    tpu.vector_store %arg3[%c0_9, %c0_10], %14 {strides = array<i32>} : memref<32x16xf32, #tpu.memory_space<vmem>>, vector<32x16xf32>,
    return
  }
  func.func @transform_0(%arg0: i32) -> (i32, i32) {
    %c0_i32 = arith.constant 0 : i32
    %c0_i32_0 = arith.constant 0 : i32
    %c0_i32_1 = arith.constant 0 : i32
    return %c0_i32, %c0_i32_0 : i32, i32
  }
  func.func @transform_1(%arg0: i32) -> (i32, i32) {
    %c0_i32 = arith.constant 0 : i32
    %c0_i32_0 = arith.constant 0 : i32
    %c0_i32_1 = arith.constant 0 : i32
    return %c0_i32, %c0_i32_0 : i32, i32
  }
  func.func @transform_2(%arg0: i32) -> (i32, i32) {
    %c0_i32 = arith.constant 0 : i32
    %c0_i32_0 = arith.constant 0 : i32
    %c0_i32_1 = arith.constant 0 : i32
    return %c0_i32, %c0_i32_0 : i32, i32
  }
}

</mosaic_0001>

<bundles_post_ra>
// kernel: tpu_custom_call.1
= control target key start
LH: loop header
LB: loop body
LE: loop exit
PB: predicated region body
PF: predicated region fallthrough
CT: control target
= control target key end

     0   :  { %vm17_vm0 = vcmask 130048   ;;  %vm642_vm1 = vcmask 261120   ;;  %v1539_v53 = vmov 32   ;;  %v1540_v54 = vmov 33   ;;  %s1768_s0 = inlined_call_operand.vmem [shape: f32[48,16], index: 0, kind: input, shape index: {}]   ;;  %s1769_s1 = inlined_call_operand.vmem [shape: f32[32,34], index: 1, kind: input, shape index: {}]   ;;  %s1770_s2 = inlined_call_operand.vmem [shape: f32[32,16], index: 2, kind: output, shape index: {}]  }
   0x1   :  { %v16_v0 = vld [vmem:[%s1768_s0 + $0x28] sm:$0xff]  ;;  %v15_v1 = vld [vmem:[%s1768_s0 + $0x20] sm:$0xff]  ;;  %v1581_v7 = vld [vmem:[%s1768_s0 + $0x10] sm:$0xff]  ;;  %1535 = vset.pattern.permute.xlu0 %v1539_v53  ;;  %1536 = vset.pattern.permute.xlu1 %v1539_v53 }
   0x2   :  { %v1565_v2 = vld [vmem:[%s1768_s0] sm:$0xff]  ;;  %v1567_v3 = vand.u32 4294901760, %v16_v0  ;;  %v1569_v4 = vand.u32 4294901760, %v15_v1  ;;  %v1576_v6 = vld [vmem:[%s1768_s0 + $0x8] sm:$0xff]  ;;  %v1586_v8 = vld [vmem:[%s1768_s0 + $0x18] sm:$0xff]  ;;  %v25_v11 = vsel %vm17_vm0, %v1581_v7, 0 }
   0x3   :  { %v19_v5 = vsel %vm17_vm0, %v1565_v2, 0  ;;  %v22_v10 = vsel %vm17_vm0, %v1576_v6, 0  ;;  %v28_v12 = vsel %vm17_vm0, %v1586_v8, 0  ;;  %v1601_v16 = vand.u32 4294901760, %v25_v11  ;;  %v618_v40 = vld [vmem:[%s1769_s1] sm:$0xff]  ;;  %v619_v42 = vld [vmem:[%s1769_s1 + $0x8] sm:$0xff] }
   0x4   :  { %v1588_v9 = vand.u32 4294901760, %v19_v5  ;;  %1389 = vmatprep.subr.mxu0 %v1567_v3  ;;  %v167_v13 = vsub.f32 %v16_v0, %v1567_v3  ;;  %v1598_v14 = vand.u32 4294901760, %v22_v10  ;;  %v174_v15 = vsub.f32 %v15_v1, %v1569_v4  ;;  %v620_v46 = vld [vmem:[%s1769_s1 + $0x10] sm:$0xff]  ;;  %v621_v49 = vld [vmem:[%s1769_s1 + $0x18] sm:$0xff]  ;;  %624 = vperm.xlu0 %1535, %v618_v40  }
   0x5   :  { %1390 = vmatpush3.msra.mxu0 %v1567_v3  ;;  %v1606_v18 = vand.u32 4294901760, %v28_v12  ;;  %v118_v22 = vsub.f32 %v25_v11, %v1601_v16  ;;  %v643_v41 = vsel %vm642_vm1, %v618_v40, 0  ;;  %v645_v44 = vsel %vm642_vm1, %v619_v42, 0  ;;  %634 = vperm.xlu1 %1536, %v620_v46  }
   0x6   :  { %v98_v17 = vsub.f32 %v19_v5, %v1588_v9  ;;  %1403 = vmatprep.mubr.f32.mxu1 %v1588_v9  ;;  %1391 = vmatprep.subr.mxu0 %v1569_v4  ;;  %v168_v19 = vand.u32 4294901760, %v167_v13  ;;  %v108_v20 = vsub.f32 %v22_v10, %v1598_v14  ;;  %v175_v21 = vand.u32 4294901760, %v174_v15 }
   0x7   :  { %1392 = vmatpush3.msra.mxu0 %v1569_v4  ;;  %v128_v24 = vsub.f32 %v28_v12, %v1606_v18  ;;  %v119_v28 = vand.u32 4294901760, %v118_v22  ;;  %v1638_v43 = vand.u32 4294901760, %v643_v41  ;;  %v1648_v48 = vsel %vm642_vm1, %v620_v46, 0 }
   0x8   :  { %v99_v23 = vand.u32 4294901760, %v98_v17  ;;  %v169_v25 = vsub.f32 %v167_v13, %v168_v19  ;;  %v109_v26 = vand.u32 4294901760, %v108_v20  ;;  %v176_v27 = vsub.f32 %v174_v15, %v175_v21  ;;  %1409 = vmatprep.subr.mxu0 %v167_v13  ;;  %629 = vperm.xlu0 %1535, %v619_v42  }
   0x9   :  { %v129_v30 = vand.u32 4294901760, %v128_v24  ;;  %v120_v34 = vsub.f32 %v118_v22, %v119_v28  ;;  %v1641_v45 = vsub.f32 %v643_v41, %v1638_v43  ;;  %v1653_v50 = vsel %vm642_vm1, %v621_v49, 0  ;;  %639 = vperm.xlu1 %1536, %v621_v49  }
   0xa   :  { %v100_v29 = vsub.f32 %v98_v17, %v99_v23  ;;  %v170_v31 = vand.u32 4294901760, %v169_v25  ;;  %v110_v32 = vsub.f32 %v108_v20, %v109_v26  ;;  %v177_v33 = vand.u32 4294901760, %v176_v27 }
   0xb   :  { %v130_v36 = vsub.f32 %v128_v24, %v129_v30  ;;  %v121_v38 = vand.u32 4294901760, %v120_v34  ;;  %v722_v47 = vand.u32 4294901760, %v1641_v45 }
   0xc   :  { %v101_v35 = vand.u32 4294901760, %v100_v29  ;;  %1399 = vmatprep.subr.mxu1 %v170_v31  ;;  %v111_v37 = vand.u32 4294901760, %v110_v32  ;;  %1537 = vset.pattern.permute.xlu0 %v1540_v54  ;;  %v1661_v29 = vand.u32 4294901760, %v1648_v48 }
   0xd   :  { %1400 = vmatpush3.msra.mxu1 %v170_v31  ;;  %v131_v39 = vand.u32 4294901760, %v130_v36  ;;  %v723_v51 = vsub.f32 %v1641_v45, %v722_v47  ;;  %1538 = vset.pattern.permute.xlu1 %v1540_v54  ;;  %v1667_v36 = vand.u32 4294901760, %v1653_v50 }
   0xe   :  { %1393 = vmatprep.mubr.f32.mxu0 %v101_v35  ;;  %1401 = vmatprep.subr.mxu1 %v177_v33 }
   0xf   :  { %1394 = vmatmul.mubr.f32.vlgmr.msra.gmra.mxu0 %v111_v37  ;;  %1402 = vmatpush3.msra.mxu1 %v177_v33  ;;  %v724_v52 = vand.u32 4294901760, %v723_v51  ;;  %v1682_v53 = vsub.f32 %v1653_v50, %v1667_v36 }
  0x10   :  { %1410 = vmatpush3.msra.mxu0 %v167_v13  ;;  %1404 = vmatmul.mubr.f32.vlgmr.msra.gmra.mxu1 %v1598_v14 }
  0x11   :  { %1419 = vmatprep.subr.mxu1 %v1567_v3  ;;  %1396 = vmatprep.mubr.f32.mxu0 %v121_v38 }
  0x12   :  { %1420 = vmatpush3.msra.mxu1 %v1567_v3  ;;  %1411 = vmatprep.subr.mxu0 %v174_v15 }
  0x13   :  { %1397 = vmatmul.mubr.f32.gmra.mxu0 %v131_v39  ;;  %1406 = vmatprep.mubr.f32.mxu1 %v1601_v16 }
  0x14   :  { %1412 = vmatpush3.msra.mxu0 %v174_v15  ;;  %1407 = vmatmul.mubr.f32.gmra.mxu1 %v1606_v18 }
  0x15   :  { %1421 = vmatprep.subr.mxu1 %v1569_v4  ;;  %1413 = vmatprep.mubr.f32.mxu0 %v98_v17 }
  0x16   :  { %1422 = vmatpush3.msra.mxu1 %v1569_v4  ;;  %1429 = vmatprep.subr.mxu0 %v168_v19 }
  0x17   :  { %1414 = vmatmul.mubr.f32.vlgmr.msra.gmra.mxu0 %v108_v20  ;;  %1423 = vmatprep.mubr.f32.mxu1 %v99_v23  ;;  %v1658_v20 = vand.u32 4294901760, %v645_v44 }
  0x18   :  { %1430 = vmatpush3.msra.mxu0 %v168_v19  ;;  %1424 = vmatmul.mubr.f32.vlgmr.msra.gmra.mxu1 %v109_v26 }
  0x19   :  { %1439 = vmatprep.subr.mxu1 %v1567_v3  ;;  %1416 = vmatprep.mubr.f32.mxu0 %v118_v22  ;;  %v1664_v32 = vsub.f32 %v645_v44, %v1658_v20 }
  0x1a   :  { %1440 = vmatpush3.msra.mxu1 %v1567_v3  ;;  %1431 = vmatprep.subr.mxu0 %v175_v21 }
  0x1b   :  { %1417 = vmatmul.mubr.f32.gmra.mxu0 %v128_v24  ;;  %1426 = vmatprep.mubr.f32.mxu1 %v119_v28 }
  0x1c   :  { %1432 = vmatpush3.msra.mxu0 %v175_v21  ;;  %1427 = vmatmul.mubr.f32.gmra.mxu1 %v129_v30 }
  0x1d   :  { %1441 = vmatprep.subr.mxu1 %v1569_v4  ;;  %1433 = vmatprep.mubr.f32.mxu0 %v1588_v9 }
  0x1e   :  { %1442 = vmatpush3.msra.mxu1 %v1569_v4  ;;  %1443 = vmatprep.mubr.f32.mxu1 %v1588_v9 }
  0x1f   :  { %1434 = vmatmul.mubr.f32.vlgmr.msra.gmra.mxu0 %v1598_v14  ;;  %1278 = vperm.xlu1 %1538, %v619_v42   ;;  %v1673_v42 = vsub.f32 %v1648_v48, %v1661_v29 }
  0x20   :  { %1436 = vmatprep.mubr.f32.mxu0 %v1601_v16  ;;  %1444 = vmatmul.mubr.f32.vlgmr.msra.gmra.mxu1 %v1598_v14 }
  0x21   :  { %1446 = vmatprep.mubr.f32.mxu1 %v1601_v16  ;;  %1274 = vperm.xlu0 %1537, %v618_v40   ;;  %v742_v48 = vand.u32 4294901760, %v1673_v42 }
  0x23   :  { %1437 = vmatmul.mubr.f32.gmra.mxu0 %v1606_v18  ;;  %1282 = vperm.xlu1 %1538, %v620_v46  }
  0x24   :  { %1447 = vmatmul.mubr.f32.gmra.mxu1 %v1606_v18  ;;  %1457 = vmatprep.mubr.f32.mxu0 %v724_v52 }
  0x25   :  { %1471 = vmatprep.mubr.f32.mxu1 %v1638_v43  ;;  %1286 = vperm.xlu0 %1537, %v621_v49   ;;  %v732_v49 = vand.u32 4294901760, %v1664_v32 }
  0xcf   :  { %v1395_v55 = vpop.f32.mrf.mxu0 }
  0xd0   :  { %v1405_v57 = vpop.f32.mrf.mxu1 }
  0xd1   :  { %v103_v56 = vpop.f32.mrf.mxu0  ;;  %v221_v0 = vadd.f32 %v1405_v57, %v1395_v55 }
  0xd2   :  { %v214_v59 = vpop.f32.mrf.mxu1 }
  0xd3   :  { %v1398_v58 = vpop.f32.mrf.mxu0  ;;  %v215_v4 = vadd.f32 %v214_v59, %v103_v56 }
  0xd4   :  { %v1408_v61 = vpop.f32.mrf.mxu1 }
  0xd5   :  { %v123_v60 = vpop.f32.mrf.mxu0  ;;  %v233_v11 = vadd.f32 %v1408_v61, %v1398_v58  ;;  %v733_v58 = vsub.f32 %v1664_v32, %v732_v49 }
  0xd6   :  { %v226_v62 = vpop.f32.mrf.mxu1 }
  0xd7   :  { %v1415_v63 = vpop.f32.mrf.mxu0  ;;  %v227_v15 = vadd.f32 %v226_v62, %v123_v60  ;;  %v752_v60 = vand.u32 4294901760, %v1682_v53 }
  0xd8   :  { %v1425_v3 = vpop.f32.mrf.mxu1  ;;  %v316_v5 = vadd.f32 %v1415_v63, %v221_v0  ;;  %v743_v0 = vsub.f32 %v1673_v42, %v742_v48 }
  0xd9   :  { %v308_v1 = vpop.f32.mrf.mxu0 }
  0xda   :  { %v404_v10 = vpop.f32.mrf.mxu1  ;;  %v309_v12 = vadd.f32 %v308_v1, %v215_v4  ;;  %v413_v16 = vadd.f32 %v1425_v3, %v316_v5  ;;  %v734_v1 = vand.u32 4294901760, %v733_v58 }
  0xdb   :  { %v1418_v9 = vpop.f32.mrf.mxu0 }
  0xdc   :  { %v1428_v14 = vpop.f32.mrf.mxu1  ;;  %v330_v17 = vadd.f32 %v1418_v9, %v233_v11  ;;  %v405_v21 = vadd.f32 %v404_v10, %v309_v12  ;;  %v753_v9 = vsub.f32 %v1682_v53, %v752_v60  ;;  %v744_v12 = vand.u32 4294901760, %v743_v0 }
  0xdd   :  { %v322_v13 = vpop.f32.mrf.mxu0 }
  0xde   :  { %v420_v18 = vpop.f32.mrf.mxu1  ;;  %v323_v22 = vadd.f32 %v322_v13, %v227_v15  ;;  %v429_v26 = vadd.f32 %v1428_v14, %v330_v17  ;;  %v754_v14 = vand.u32 4294901760, %v753_v9  ;;  %v625_v17 = vpop.permute.xlu0 %624 }
  0xdf   :  { %v1435_v19 = vpop.f32.mrf.mxu0 }
  0xe0   :  { %v512_v23 = vadd.f32 %v1435_v19, %v413_v16  ;;  %v1445_v25 = vpop.f32.mrf.mxu1  ;;  %v421_v33 = vadd.f32 %v420_v18, %v323_v22  ;;  %v635_v22 = vpop.permute.xlu1 %634 }
  0xe1   :  { %v505_v24 = vpop.f32.mrf.mxu0 }
  0xe2   :  { %v506_v27 = vadd.f32 %v505_v24, %v405_v21  ;;  %v603_v28 = vadd.f32 %v1445_v25, %v512_v23  ;;  %v596_v31 = vpop.f32.mrf.mxu1  ;;  %v630_v25 = vpop.permute.xlu0 %629 }
  0xe3   :  { %v1438_v30 = vpop.f32.mrf.mxu0 }
  0xe4   :  { %v524_v34 = vadd.f32 %v1438_v30, %v429_v26  ;;  %v597_v35 = vadd.f32 %v596_v31, %v506_v27  ;;  %v1669_v37 = vand.u32 4294901760, %v603_v28  ;;  %v1448_v39 = vpop.f32.mrf.mxu1 }
  0xe5   :  { %v517_v38 = vpop.f32.mrf.mxu0 }
  0xe6   :  { %v518_v40 = vadd.f32 %v517_v38, %v421_v33  ;;  %v615_v41 = vadd.f32 %v1448_v39, %v524_v34  ;;  %v1675_v46 = vand.u32 4294901760, %v597_v35  ;;  %v608_v44 = vpop.f32.mrf.mxu1  ;;  %v800_v54 = vsub.f32 %v603_v28, %v1669_v37  ;;  %v640_v28 = vpop.permute.xlu1 %639 }
  0xe8   :  { %v1678_v51 = vand.u32 4294901760, %v615_v41  ;;  %v609_v52 = vadd.f32 %v608_v44, %v518_v40  ;;  %v807_v57 = vsub.f32 %v597_v35, %v1675_v46  ;;  %v801_v61 = vand.u32 4294901760, %v800_v54 }
  0xea   :  { %v786_v55 = vsub.f32 %v615_v41, %v1678_v51  ;;  %v1686_v56 = vand.u32 4294901760, %v609_v52  ;;  %1449 = vmatprep.subr.mxu0 %v1678_v51  ;;  %v808_v3 = vand.u32 4294901760, %v807_v57  ;;  %v802_v10 = vsub.f32 %v800_v54, %v801_v61 }
  0xeb   :  { %1450 = vmatpush3.msra.mxu0 %v1678_v51 }
  0xec   :  { %v793_v50 = vsub.f32 %v609_v52, %v1686_v56  ;;  %1451 = vmatprep.subr.mxu0 %v1686_v56  ;;  %v787_v59 = vand.u32 4294901760, %v786_v55  ;;  %v809_v13 = vsub.f32 %v807_v57, %v808_v3  ;;  %v803_v15 = vand.u32 4294901760, %v802_v10 }
  0xed   :  { %1452 = vmatpush3.msra.mxu0 %v1686_v56 }
  0xee   :  { %1453 = vmatprep.subr.mxu0 %v1669_v37  ;;  %v788_v62 = vsub.f32 %v786_v55, %v787_v59  ;;  %v794_v63 = vand.u32 4294901760, %v793_v50  ;;  %v810_v16 = vand.u32 4294901760, %v809_v13 }
  0xef   :  { %1454 = vmatpush3.msra.mxu0 %v1669_v37 }
  0xf0   :  { %1455 = vmatprep.subr.mxu0 %v1675_v46  ;;  %v789_v4 = vand.u32 4294901760, %v788_v62  ;;  %v795_v5 = vsub.f32 %v793_v50, %v794_v63 }
  0xf1   :  { %1456 = vmatpush3.msra.mxu0 %v1675_v46 }
  0xf2   :  { %1463 = vmatprep.subr.mxu1 %v789_v4  ;;  %1477 = vmatprep.subr.mxu0 %v786_v55  ;;  %v796_v11 = vand.u32 4294901760, %v795_v5 }
  0xf3   :  { %1458 = vmatmul.mubr.f32.vlgmr.msra.gmra.mxu0 %v734_v1  ;;  %1464 = vmatpush3.msra.mxu1 %v789_v4 }
  0xf4   :  { %1478 = vmatpush3.msra.mxu0 %v786_v55  ;;  %1465 = vmatprep.subr.mxu1 %v796_v11 }
  0xf5   :  { %1479 = vmatprep.subr.mxu0 %v793_v50  ;;  %1466 = vmatpush3.msra.mxu1 %v796_v11 }
  0xf6   :  { %1480 = vmatpush3.msra.mxu0 %v793_v50  ;;  %1460 = vmatprep.mubr.f32.mxu0 %v744_v12 }
  0xf7   :  { %1467 = vmatprep.subr.mxu1 %v803_v15  ;;  %1481 = vmatprep.subr.mxu0 %v800_v54 }
  0xf8   :  { %1461 = vmatmul.mubr.f32.gmra.mxu0 %v754_v14  ;;  %1468 = vmatpush3.msra.mxu1 %v803_v15 }
  0xf9   :  { %1482 = vmatpush3.msra.mxu0 %v800_v54  ;;  %1469 = vmatprep.subr.mxu1 %v810_v16 }
  0xfa   :  { %1483 = vmatprep.subr.mxu0 %v807_v57  ;;  %1470 = vmatpush3.msra.mxu1 %v810_v16 }
  0xfb   :  { %1484 = vmatpush3.msra.mxu0 %v807_v57  ;;  %1472 = vmatmul.mubr.f32.vlgmr.msra.gmra.mxu1 %v1658_v20 }
  0xfc   :  { %1485 = vmatprep.mubr.f32.mxu0 %v1641_v45  ;;  %1491 = vmatprep.subr.mxu1 %v1678_v51 }
  0xfd   :  { %1505 = vmatprep.subr.mxu0 %v787_v59  ;;  %1486 = vmatmul.mubr.f32.vlgmr.msra.gmra.mxu0 %v1664_v32 }
  0xfe   :  { %1492 = vmatpush3.msra.mxu1 %v1678_v51  ;;  %1506 = vmatpush3.msra.mxu0 %v787_v59 }
  0xff   :  { %1493 = vmatprep.subr.mxu1 %v1686_v56  ;;  %1507 = vmatprep.subr.mxu0 %v794_v63 }
 0x100   :  { %1474 = vmatprep.mubr.f32.mxu1 %v1661_v29  ;;  %1494 = vmatpush3.msra.mxu1 %v1686_v56 }
 0x101   :  { %1508 = vmatpush3.msra.mxu0 %v794_v63  ;;  %1475 = vmatmul.mubr.f32.gmra.mxu1 %v1667_v36 }
 0x102   :  { %1495 = vmatprep.subr.mxu1 %v1669_v37  ;;  %1509 = vmatprep.subr.mxu0 %v801_v61 }
 0x103   :  { %1488 = vmatprep.mubr.f32.mxu0 %v1673_v42  ;;  %1496 = vmatpush3.msra.mxu1 %v1669_v37 }
 0x104   :  { %1510 = vmatpush3.msra.mxu0 %v801_v61  ;;  %1497 = vmatprep.subr.mxu1 %v1675_v46  ;;  %v1275_v61 = vpop.permute.xlu0 %1274 }
 0x105   :  { %1489 = vmatmul.mubr.f32.gmra.mxu0 %v1682_v53  ;;  %1511 = vmatprep.subr.mxu0 %v808_v3 }
 0x106   :  { %1498 = vmatpush3.msra.mxu1 %v1675_v46  ;;  %1499 = vmatprep.mubr.f32.mxu1 %v722_v47 }
 0x107   :  { %1512 = vmatpush3.msra.mxu0 %v808_v3  ;;  %1500 = vmatmul.mubr.f32.vlgmr.msra.gmra.mxu1 %v732_v49  ;;  %v1279_v3 = vpop.permute.xlu1 %1278 }
 0x108   :  { %1519 = vmatprep.subr.mxu1 %v1678_v51  ;;  %1513 = vmatprep.mubr.f32.mxu0 %v1638_v43  ;;  %v1287_v16 = vpop.permute.xlu0 %1286 }
 0x109   :  { %1520 = vmatpush3.msra.mxu1 %v1678_v51  ;;  %1514 = vmatmul.mubr.f32.vlgmr.msra.gmra.mxu0 %v1658_v20 }
 0x10a   :  { %1521 = vmatprep.subr.mxu1 %v1686_v56  ;;  %1502 = vmatprep.mubr.f32.mxu1 %v742_v48 }
 0x10b   :  { %1522 = vmatpush3.msra.mxu1 %v1686_v56  ;;  %1516 = vmatprep.mubr.f32.mxu0 %v1661_v29 }
 0x10c   :  { %1503 = vmatmul.mubr.f32.gmra.mxu1 %v752_v60  ;;  %1523 = vmatprep.subr.mxu1 %v1669_v37 }
 0x10d   :  { %1524 = vmatpush3.msra.mxu1 %v1669_v37  ;;  %1517 = vmatmul.mubr.f32.gmra.mxu0 %v1667_v36 }
 0x10e   :  { %1525 = vmatprep.subr.mxu1 %v1675_v46  ;;  %1527 = vmatprep.mubr.f32.mxu1 %v1638_v43 }
 0x10f   :  { %1526 = vmatpush3.msra.mxu1 %v1675_v46 }
 0x110   :  { %1528 = vmatmul.mubr.f32.vlgmr.msra.gmra.mxu1 %v1658_v20 }
 0x111   :  { %1530 = vmatprep.mubr.f32.mxu1 %v1661_v29 }
 0x114   :  { %1531 = vmatmul.mubr.f32.gmra.mxu1 %v1667_v36 }
 0x1b3   :  { %v1459_v45 = vpop.f32.mrf.mxu0 }
 0x1b4   :  { %v737_v26 = vadd.f32 %v1459_v45, %v630_v25 }
 0x1b5   :  { %v726_v47 = vpop.f32.mrf.mxu0 }
 0x1b6   :  { %v727_v20 = vadd.f32 %v726_v47, %v625_v17  ;;  %v1283_v17 = vpop.permute.xlu1 %1282 }
 0x1b8   :  { %v1462_v18 = vpop.f32.mrf.mxu0 }
 0x1b9   :  { %v757_v29 = vadd.f32 %v1462_v18, %v640_v28 }
 0x1ba   :  { %v746_v19 = vpop.f32.mrf.mxu0 }
 0x1bb   :  { %v1473_v21 = vpop.f32.mrf.mxu1  ;;  %v747_v40 = vadd.f32 %v746_v19, %v635_v22 }
 0x1bc   :  { %v854_v31 = vadd.f32 %v1473_v21, %v737_v26 }
 0x1bd   :  { %v847_v23 = vpop.f32.mrf.mxu1  ;;  %v1487_v24 = vpop.f32.mrf.mxu0 }
 0x1be   :  { %v848_v33 = vadd.f32 %v847_v23, %v727_v20  ;;  %v953_v36 = vadd.f32 %v1487_v24, %v854_v31 }
 0x1bf   :  { %v945_v27 = vpop.f32.mrf.mxu0 }
 0x1c0   :  { %v946_v41 = vadd.f32 %v945_v27, %v848_v33 }
 0x1c1   :  { %v1476_v43 = vpop.f32.mrf.mxu1 }
 0x1c2   :  { %v866_v37 = vadd.f32 %v1476_v43, %v757_v29 }
 0x1c3   :  { %v859_v30 = vpop.f32.mrf.mxu1 }
 0x1c4   :  { %v860_v44 = vadd.f32 %v859_v30, %v747_v40 }
 0x1c5   :  { %v1490_v32 = vpop.f32.mrf.mxu0 }
 0x1c6   :  { %v967_v51 = vadd.f32 %v1490_v32, %v866_v37 }
 0x1c7   :  { %v959_v34 = vpop.f32.mrf.mxu0  ;;  %v1501_v35 = vpop.f32.mrf.mxu1 }
 0x1c8   :  { %v1052_v42 = vadd.f32 %v1501_v35, %v953_v36  ;;  %v960_v48 = vadd.f32 %v959_v34, %v860_v44 }
 0x1c9   :  { %v1043_v38 = vpop.f32.mrf.mxu1  ;;  %v1515_v39 = vpop.f32.mrf.mxu0 }
 0x1ca   :  { %v1044_v52 = vadd.f32 %v1043_v38, %v946_v41  ;;  %v1157_v54 = vadd.f32 %v1515_v39, %v1052_v42 }
 0x1cb   :  { %v1150_v46 = vpop.f32.mrf.mxu0 }
 0x1cc   :  { %v1504_v49 = vpop.f32.mrf.mxu1  ;;  %v1151_v58 = vadd.f32 %v1150_v46, %v1044_v52 }
 0x1cd   :  { %v1068_v55 = vadd.f32 %v1504_v49, %v967_v51  ;;  %v1518_v56 = vpop.f32.mrf.mxu0 }
 0x1ce   :  { %v1059_v53 = vpop.f32.mrf.mxu1 }
 0x1cf   :  { %v1060_v59 = vadd.f32 %v1059_v53, %v960_v48  ;;  %v1169_v62 = vadd.f32 %v1518_v56, %v1068_v55  ;;  %v1162_v63 = vpop.f32.mrf.mxu0 }
 0x1d0   :  { %v1529_v57 = vpop.f32.mrf.mxu1 }
 0x1d1   :  { %v1250_v50 = vadd.f32 %v1529_v57, %v1157_v54  ;;  %v1163_v11 = vadd.f32 %v1162_v63, %v1060_v59 }
 0x1d2   :  { %v1243_v60 = vpop.f32.mrf.mxu1 }
 0x1d3   :  { %v1266_v0 = vadd.f32 %v1250_v50, %v1576_v6  ;;  %v1244_v1 = vadd.f32 %v1243_v60, %v1151_v58 }
 0x1d4   :  { %v1532_v4 = vpop.f32.mrf.mxu1 }
 0x1d5   :  { %vm1270_vm2 = vcmp.ge.f32.partialorder %v1266_v0, 0.0  ;;  %v1265_v5 = vadd.f32 %v1244_v1, %v1565_v2  ;;  %v1290_v9 = vmul.f32 %v1279_v3, %v1266_v0  ;;  %v1262_v10 = vadd.f32 %v1532_v4, %v1169_v62 }
 0x1d6   :  { %v1255_v12 = vpop.f32.mrf.mxu1 }
 0x1d7   :  { %vm1269_vm3 = vcmp.ge.f32.partialorder %v1265_v5, 0.0  ;;  %v1294_v13 = vsel %vm1270_vm2, %v1266_v0, %v1290_v9  ;;  %v1289_v14 = vmul.f32 %v1275_v61, %v1265_v5  ;;  %v1268_v15 = vadd.f32 %v1262_v10, %v1586_v8 }
 0x1d8   :  { %1298 = vst.msk [vmem:[%s1770_s2 + $0x8] sm:$0xff] %vm17_vm0, %v1294_v13  ;;  %v1256_v6 = vadd.f32 %v1255_v12, %v1163_v11 }
 0x1d9   :  { %v1293_v45 = vsel %vm1269_vm3, %v1265_v5, %v1289_v14  ;;  %vm1272_vm4 = vcmp.ge.f32.partialorder %v1268_v15, 0.0  ;;  %v1292_v47 = vmul.f32 %v1287_v16, %v1268_v15 }
 0x1da   :  { %1297 = vst.msk [vmem:[%s1770_s2] sm:$0xff] %vm17_vm0, %v1293_v45  ;;  %v1267_v2 = vadd.f32 %v1256_v6, %v1581_v7 }
 0x1db   :  { %v1296_v18 = vsel %vm1272_vm4, %v1268_v15, %v1292_v47 }
 0x1dc   :  { %vm1271_vm5 = vcmp.ge.f32.partialorder %v1267_v2, 0.0  ;;  %v1291_v8 = vmul.f32 %v1283_v17, %v1267_v2  ;;  %1300 = vst.msk [vmem:[%s1770_s2 + $0x18] sm:$0xff] %vm17_vm0, %v1296_v18 }
 0x1de   :  { %v1295_v19 = vsel %vm1271_vm5, %v1267_v2, %v1291_v8 }
 0x1df   :  { %1299 = vst.msk [vmem:[%s1770_s2 + $0x10] sm:$0xff] %vm17_vm0, %v1295_v19 }

</bundles_post_ra>
